<compile_context>
chip_gen: v6e
topology: v6e:2x2x1
jax: 0.10.0
libtpu: 0.0.40
codegen_flags: <defaults>
</compile_context>

<pallas_src>
import functools

import jax
import jax.numpy as jnp
from jax.experimental import pallas as pl
from jax.experimental.pallas import tpu as pltpu


def _round_up(x, m):
    return (x + m - 1) // m * m


def _sampler_kernel(x_ref, w_ref, b_ref, *rest, l_pad, translate):
    """One fused MXU matmul (bf16 in, f32 acc) + f32 elementwise tail."""
    if translate:
        mu_ref, lv_ref = rest
    else:
        eps_ref, z_ref, mu_ref, lv_ref = rest

    # Fused projection: columns [0:l_pad] -> mu, [l_pad:2*l_pad] -> logvar.
    y = jnp.dot(x_ref[...], w_ref[...],
                preferred_element_type=jnp.float32) + b_ref[...]
    mu = y[:, :l_pad]                      # vreg slice at a 128-lane boundary
    lv = y[:, l_pad:]

    mu_ref[...] = mu
    lv_ref[...] = lv
    if not translate:
        z_ref[...] = mu + jnp.exp(0.5 * lv) * eps_ref[...]


def fuse_sampler_params(w_mu, b_mu, w_lv, b_lv, param_dtype=jnp.bfloat16):
    """Build the fused bf16 weight slab / f32 bias ONCE (parameter init)."""
    hidden, latent = w_mu.shape
    assert w_lv.shape == (hidden, latent)
    l_pad = _round_up(latent, 128)
    w = (jnp.zeros((hidden, 2 * l_pad), param_dtype)
         .at[:, :latent].set(w_mu.astype(param_dtype))
         .at[:, l_pad:l_pad + latent].set(w_lv.astype(param_dtype)))
    b = (jnp.zeros((1, 2 * l_pad), jnp.float32)
         .at[:, :latent].set(jnp.reshape(b_mu, (1, latent)).astype(jnp.float32))
         .at[:, l_pad:l_pad + latent].set(
             jnp.reshape(b_lv, (1, latent)).astype(jnp.float32)))
    return w, b, latent


def sampler_forward(x, w_fused, b_fused, latent, *, eps=None, translate=False,
                    block_b=512):
    """Diagonal-Gaussian sampler forward.  Returns (z, mu, logvar)."""
    batch, hidden = x.shape
    two_l_pad = w_fused.shape[1]
    l_pad = two_l_pad // 2
    assert w_fused.shape[0] == hidden and b_fused.shape == (1, two_l_pad)

    f32 = jnp.float32
    x = x.astype(w_fused.dtype)            # bf16 activation feed to the MXU

    # Batch tile: full batch when small (block dim == array dim is always
    # legal), else a large sublane-aligned tile; remainder handled by cdiv.
    if batch <= block_b:
        tb = batch
    else:
        tb = max(8, (block_b // 8) * 8)
    grid = (pl.cdiv(batch, tb),)
    # TODO(synk): on v7x (2 TensorCores/chip) cap tb so the grid has >= 2
    # iterations when batch is large (gate via pltpu.get_tpu_info()).

    n_out = 2 if translate else 3
    in_specs = [
        pl.BlockSpec((tb, hidden), lambda i: (i, 0)),           # x: batch-tiled
        pl.BlockSpec((hidden, two_l_pad), lambda i: (0, 0)),    # fused W: resident
        pl.BlockSpec((1, two_l_pad), lambda i: (0, 0)),         # fused b: resident
    ]
    args = [x, w_fused, b_fused]
    if not translate:
        if eps is None:
            raise ValueError("eps is required when translate=False")
        eps = jnp.asarray(eps, f32)
        if eps.shape[1] != l_pad:           # pad noise columns to lane-dense width
            eps = jnp.zeros((batch, l_pad), f32).at[:, :eps.shape[1]].set(eps)
        in_specs.append(pl.BlockSpec((tb, l_pad), lambda i: (i, 0)))
        args.append(eps)

    out_specs = tuple(pl.BlockSpec((tb, l_pad), lambda i: (i, 0))
                      for _ in range(n_out))
    out_shape = tuple(jax.ShapeDtypeStruct((batch, l_pad), f32)
                      for _ in range(n_out))

    # Explicit VMEM budget: double-buffered tiles + resident weights + headroom
    # (keeps the 512-row tile legal under v5e's 16 MiB default scoped VMEM).
    bpe_in = jnp.dtype(w_fused.dtype).itemsize
    tile_bytes = (tb * hidden * bpe_in
                  + (0 if translate else tb * l_pad * 4)
                  + n_out * tb * l_pad * 4)
    resident_bytes = hidden * two_l_pad * bpe_in + two_l_pad * 4
    vmem_limit = int(2 * (tile_bytes + resident_bytes) * 1.5) + (2 << 20)
    vmem_limit = min(max(vmem_limit, 4 << 20), 128 << 20)

    cost = pl.CostEstimate(
        flops=2 * batch * hidden * two_l_pad,
        transcendentals=0 if translate else batch * l_pad,
        bytes_accessed=(batch * hidden * bpe_in
                        + hidden * two_l_pad * bpe_in
                        + two_l_pad * 4
                        + (0 if translate else batch * l_pad * 4)
                        + n_out * batch * l_pad * 4),
    )

    kernel = functools.partial(_sampler_kernel, l_pad=l_pad, translate=translate)
    outs = pl.pallas_call(
        kernel,
        out_shape=out_shape,
        grid=grid,
        in_specs=in_specs,
        out_specs=out_specs,
        compiler_params=pltpu.CompilerParams(
            dimension_semantics=("parallel",),
            vmem_limit_bytes=vmem_limit),
        cost_estimate=cost,
    )(*args)

    if translate:
        mu_p, lv_p = outs
        mu = mu_p[:, :latent]
        logvar = lv_p[:, :latent]
        z = mu                              # inference path: no duplicated store
    else:
        z_p, mu_p, lv_p = outs
        z = z_p[:, :latent]
        mu = mu_p[:, :latent]
        logvar = lv_p[:, :latent]
    return z, mu, logvar


if __name__ == "__main__":
    # Small shapes implied by Sampler(latent_dim, hidden_size) on (B, H) input.
    batch_size = 8
    hidden_size = 32
    latent_dim = 16

    key = jax.random.PRNGKey(0)
    k_x, k_wmu, k_bmu, k_wlv, k_blv, k_eps = jax.random.split(key, 6)

    x = jax.random.normal(k_x, (batch_size, hidden_size), jnp.float32)
    w_mu = 0.1 * jax.random.normal(k_wmu, (hidden_size, latent_dim), jnp.float32)
    b_mu = 0.1 * jax.random.normal(k_bmu, (1, latent_dim), jnp.float32)
    w_lv = 0.1 * jax.random.normal(k_wlv, (hidden_size, latent_dim), jnp.float32)
    b_lv = 0.1 * jax.random.normal(k_blv, (1, latent_dim), jnp.float32)
    eps = jax.random.normal(k_eps, (batch_size, latent_dim), jnp.float32)

    # Fused bf16 parameter slab built once (not per forward call).
    w_fused, b_fused, latent = fuse_sampler_params(w_mu, b_mu, w_lv, b_lv)

    # Training-mode forward (reparameterized sample).
    z, mu, logvar = sampler_forward(x, w_fused, b_fused, latent, eps=eps,
                                    translate=False)
    jax.block_until_ready((z, mu, logvar))

    # Translate-mode forward (returns the mean; no noise, no z writeback).
    z_t, mu_t, lv_t = sampler_forward(x, w_fused, b_fused, latent,
                                      translate=True)
    jax.block_until_ready((z_t, mu_t, lv_t))

    # Reference with bf16 operands / f32 accumulation (matches kernel dtypes).
    xb = x.astype(jnp.bfloat16)
    mu_ref = jnp.dot(xb, w_mu.astype(jnp.bfloat16),
                     preferred_element_type=jnp.float32) + b_mu
    lv_ref = jnp.dot(xb, w_lv.astype(jnp.bfloat16),
                     preferred_element_type=jnp.float32) + b_lv
    z_ref = mu_ref + jnp.exp(0.5 * lv_ref) * eps

    assert jnp.allclose(mu, mu_ref, atol=2e-2, rtol=2e-2)
    assert jnp.allclose(logvar, lv_ref, atol=2e-2, rtol=2e-2)
    assert jnp.allclose(z, z_ref, atol=5e-2, rtol=5e-2)
    assert jnp.allclose(mu_t, mu_ref, atol=2e-2, rtol=2e-2)
    assert jnp.allclose(lv_t, lv_ref, atol=2e-2, rtol=2e-2)
    assert jnp.allclose(z_t, mu_t)

    # Exact self-consistency of the in-kernel f32 reparameterization.
    assert jnp.allclose(z, mu + jnp.exp(0.5 * logvar) * eps, atol=1e-5)
    assert bool(jnp.all(jnp.isfinite(z)))

    print("KERNEL_OK")
</pallas_src>

<mosaic_0001>
module attributes {stable_mosaic.version = 11 : i64} {
  func.func @_sampler_kernel(%arg0: i32, %arg1: memref<8x32xbf16, #tpu.memory_space<vmem>>, %arg2: memref<32x256xbf16, #tpu.memory_space<vmem>>, %arg3: memref<1x256xf32, #tpu.memory_space<vmem>>, %arg4: memref<8x128xf32, #tpu.memory_space<vmem>>, %arg5: memref<8x128xf32, #tpu.memory_space<vmem>>, %arg6: memref<8x128xf32, #tpu.memory_space<vmem>>, %arg7: memref<8x128xf32, #tpu.memory_space<vmem>>) attributes {dimension_semantics = [#tpu.dimension_semantics<parallel>], iteration_bounds = array<i64: 1>, scalar_prefetch = 0 : i64, scratch_operands = 0 : i64, tpu.core_type = #tpu.core_type<tc>, window_params = [{transform_indices = @transform_0, window_bounds = array<i64: 8, 32>}, {pipeline_mode = #tpu.pipeline_mode<synchronous>, transform_indices = @transform_1, window_bounds = array<i64: 32, 256>}, {pipeline_mode = #tpu.pipeline_mode<synchronous>, transform_indices = @transform_2, window_bounds = array<i64: 1, 256>}, {transform_indices = @transform_3, window_bounds = array<i64: 8, 128>}, {transform_indices = @transform_4, window_bounds = array<i64: 8, 128>}, {transform_indices = @transform_5, window_bounds = array<i64: 8, 128>}, {transform_indices = @transform_6, window_bounds = array<i64: 8, 128>}]} {
    %c0 = arith.constant 0 : index
    %c0_0 = arith.constant 0 : index
    %0 = vector.load %arg1[%c0, %c0_0] : memref<8x32xbf16, #tpu.memory_space<vmem>>, vector<8x32xbf16>
    %c0_1 = arith.constant 0 : index
    %c0_2 = arith.constant 0 : index
    %1 = vector.load %arg2[%c0_1, %c0_2] : memref<32x256xbf16, #tpu.memory_space<vmem>>, vector<32x256xbf16>
    %cst = arith.constant dense<0.000000e+00> : vector<8x256xf32>
    %2 = tpu.matmul %0, %1, %cst {dimension_numbers = #tpu.dot_dimension_numbers<[1], [0], [0], [1], [0, 0, 1, 1], [], []>} : vector<8x32xbf16>, vector<32x256xbf16>, vector<8x256xf32> -> vector<8x256xf32>
    %c0_3 = arith.constant 0 : index
    %c0_4 = arith.constant 0 : index
    %3 = vector.load %arg3[%c0_3, %c0_4] : memref<1x256xf32, #tpu.memory_space<vmem>>, vector<1x256xf32>
    %4 = vector.broadcast %3 : vector<1x256xf32> to vector<8x256xf32>
    %5 = arith.addf %2, %4 : vector<8x256xf32>
    %6 = vector.extract_strided_slice %5 {offsets = [0, 0], sizes = [8, 128], strides = [1, 1]} : vector<8x256xf32> to vector<8x128xf32>
    %7 = vector.extract_strided_slice %5 {offsets = [0, 128], sizes = [8, 128], strides = [1, 1]} : vector<8x256xf32> to vector<8x128xf32>
    %c0_5 = arith.constant 0 : index
    %c0_6 = arith.constant 0 : index
    %8 = vector.load %arg6[%c0_5, %c0_6] : memref<8x128xf32, #tpu.memory_space<vmem>>, vector<8x128xf32>
    tpu.vector_store %arg6[%c0_5, %c0_6], %6 {strides = array<i32>} : memref<8x128xf32, #tpu.memory_space<vmem>>, vector<8x128xf32>,
    %c0_7 = arith.constant 0 : index
    %c0_8 = arith.constant 0 : index
    %9 = vector.load %arg7[%c0_7, %c0_8] : memref<8x128xf32, #tpu.memory_space<vmem>>, vector<8x128xf32>
    tpu.vector_store %arg7[%c0_7, %c0_8], %7 {strides = array<i32>} : memref<8x128xf32, #tpu.memory_space<vmem>>, vector<8x128xf32>,
    %cst_9 = arith.constant 5.000000e-01 : f32
    %10 = vector.broadcast %cst_9 : f32 to vector<8x128xf32>
    %11 = arith.mulf %10, %7 : vector<8x128xf32>
    %12 = math.exp %11 : vector<8x128xf32>
    %c0_10 = arith.constant 0 : index
    %c0_11 = arith.constant 0 : index
    %13 = vector.load %arg4[%c0_10, %c0_11] : memref<8x128xf32, #tpu.memory_space<vmem>>, vector<8x128xf32>
    %14 = arith.mulf %12, %13 : vector<8x128xf32>
    %15 = arith.addf %6, %14 : vector<8x128xf32>
    %c0_12 = arith.constant 0 : index
    %c0_13 = arith.constant 0 : index
    %16 = vector.load %arg5[%c0_12, %c0_13] : memref<8x128xf32, #tpu.memory_space<vmem>>, vector<8x128xf32>
    tpu.vector_store %arg5[%c0_12, %c0_13], %15 {strides = array<i32>} : memref<8x128xf32, #tpu.memory_space<vmem>>, vector<8x128xf32>,
    return
  }
  func.func @transform_0(%arg0: i32) -> (i32, i32) {
    %c0_i32 = arith.constant 0 : i32
    %c0_i32_0 = arith.constant 0 : i32
    return %arg0, %c0_i32 : i32, i32
  }
  func.func @transform_1(%arg0: i32) -> (i32, i32) {
    %c0_i32 = arith.constant 0 : i32
    %c0_i32_0 = arith.constant 0 : i32
    %c0_i32_1 = arith.constant 0 : i32
    return %c0_i32, %c0_i32_0 : i32, i32
  }
  func.func @transform_2(%arg0: i32) -> (i32, i32) {
    %c0_i32 = arith.constant 0 : i32
    %c0_i32_0 = arith.constant 0 : i32
    %c0_i32_1 = arith.constant 0 : i32
    return %c0_i32, %c0_i32_0 : i32, i32
  }
  func.func @transform_3(%arg0: i32) -> (i32, i32) {
    %c0_i32 = arith.constant 0 : i32
    %c0_i32_0 = arith.constant 0 : i32
    return %arg0, %c0_i32 : i32, i32
  }
  func.func @transform_4(%arg0: i32) -> (i32, i32) {
    %c0_i32 = arith.constant 0 : i32
    %c0_i32_0 = arith.constant 0 : i32
    return %arg0, %c0_i32 : i32, i32
  }
  func.func @transform_5(%arg0: i32) -> (i32, i32) {
    %c0_i32 = arith.constant 0 : i32
    %c0_i32_0 = arith.constant 0 : i32
    return %arg0, %c0_i32 : i32, i32
  }
  func.func @transform_6(%arg0: i32) -> (i32, i32) {
    %c0_i32 = arith.constant 0 : i32
    %c0_i32_0 = arith.constant 0 : i32
    return %arg0, %c0_i32 : i32, i32
  }
}

</mosaic_0001>

<bundles_post_ra>
// kernel: tpu_custom_call.1
= control target key start
LH: loop header
LB: loop body
LE: loop exit
PB: predicated region body
PF: predicated region fallthrough
CT: control target
= control target key end

     0   :  { %12 = vsyncpa [#allocation3], 0  ;;  %s409_s0 = inlined_call_operand.hbm [shape: bf16[8,32], index: 0, kind: input, shape index: {}]   ;;  %s410_s1 = inlined_call_operand.hbm [shape: bf16[32,256], index: 1, kind: input, shape index: {}]   ;;  %s411_s2 = inlined_call_operand.vmem [shape: f32[1,256], index: 2, kind: input, shape index: {}]   ;;  %s412_s3 = inlined_call_operand.hbm [shape: f32[8,128], index: 3, kind: input, shape index: {}]   ;;  %s413_s4 = inlined_call_operand.hbm [shape: f32[8,128], index: 4, kind: output, shape index: {0}]   ;;  %s414_s5 = inlined_call_operand.hbm [shape: f32[8,128], index: 5, kind: output, shape index: {1}]   ;;  %s415_s6 = inlined_call_operand.hbm [shape: f32[8,128], index: 6, kind: output, shape index: {2}]  }
   0x1   :  { %13 = vsyncpa [#allocation6], 0 }
   0x2   :  { %14 = vsyncpa [#allocation4], 0 }
   0x3   :  { %15 = vsyncpa [#allocation10], 0  ;;  %s344_s21 = smov [#allocation5]  }
   0x4   :  { %s31_s22 = sshll.u32 %s344_s21, 4  ;;  %s32_s22 = int_to_ptr.vmem [resolvable:$true] %s31_s22 }
   0x5   :  { %s224_s23 = scalar_lea.vmem %s32_s22, 512  ;;  %p229_p1 = scmp.lt.s32.totalorder %s32_s22, %s32_s22 }
   0x6   :  { %p225_p0 = scmp.ne.s32.totalorder %s32_s22, %s224_s23  ;;  %p230_p2 = scmp.lt.s32.totalorder %s224_s23, %s224_s23 }
   0x8   :  { %p231_p3 = por %p230_p2, %p229_p1 }
   0xa   :  { %p232_p4 = pnand %p231_p3, %p225_p0 }
   0xc   :  { %235 = shalt.err (!%p232_p4)
}
   0xd   :  { %s345_s24 = smov 128   ;;  %s346_s25 = smov 8  }
   0xe   :  { %37 = dma.hbm_to_vmem [thread:$0]  %s410_s1, 512, %s32_s22, [#allocation6], %s345_s24, %s345_s24, %s346_s25  }
   0xf   :  { %s347_s28 = smov [#allocation2]   ;;  %s348_s30 = smov [#allocation7]  }
  0x10   :  { %s22_s29 = sshll.u32 %s347_s28, 4  ;;  %s46_s7 = sshll.u32 %s348_s30, 4  ;;  %s23_s29 = int_to_ptr.vmem [resolvable:$true] %s22_s29  ;;  %s47_s7 = int_to_ptr.vmem [resolvable:$true] %s46_s7 }
  0x11   :  { %s244_s8 = scalar_lea.vmem %s23_s29, 64  ;;  %p249_p6 = scmp.lt.s32.totalorder %s23_s29, %s23_s29 }
  0x12   :  { %p245_p5 = scmp.ne.s32.totalorder %s23_s29, %s244_s8  ;;  %p250_p7 = scmp.lt.s32.totalorder %s244_s8, %s244_s8 }
  0x14   :  { %p251_p8 = por %p250_p7, %p249_p6 }
  0x16   :  { %p252_p9 = pnand %p251_p8, %p245_p5 }
  0x18   :  { %255 = shalt.err (!%p252_p9)
}
  0x19   :  { %25 = dma.hbm_to_vmem [thread:$0]  %s409_s0, 64, %s23_s29, [#allocation3]  }
  0x1a   :  { %s264_s11 = scalar_lea.vmem %s47_s7, 128  ;;  %p269_p11 = scmp.lt.s32.totalorder %s47_s7, %s47_s7 }
  0x1b   :  { %p265_p10 = scmp.ne.s32.totalorder %s47_s7, %s264_s11  ;;  %p270_p12 = scmp.lt.s32.totalorder %s264_s11, %s264_s11 }
  0x1d   :  { %p271_p13 = por %p270_p12, %p269_p11 }
  0x1f   :  { %p272_p0 = pnand %p271_p13, %p265_p10 }
  0x21   :  { %275 = shalt.err (!%p272_p0)
}
  0x22   :  { %49 = dma.hbm_to_vmem [thread:$0]  %s412_s3, 128, %s47_s7, [#allocation6]  }
  0x23   :  { %336 = dma.done.wait [#allocation3], 64  }
  0x24   :  { %337 = vsyncadd [#allocation3], 4294967232 }
  0x25   :  { %338 = dma.done.wait [#allocation6], 640  }
  0x26   :  { %339 = vsyncadd [#allocation6], 4294966656  ;;  %v349_v0 = vmov 0   ;;  %v208_v1 = vld [vmem:[#allocation5 + $0x14] ss:$8 sps:$4 sm:$0xff]   ;;  %vm97_vm0 = vcmask 261120   ;;  %v67_v6 = vlaneseq }
  0x27   :  { %133 = vmatprep.mubr.bf16.mxu0 %v349_v0  ;;  %v210_v2 = vld [vmem:[#allocation5 + $0x10] ss:$8 sps:$4 sm:$0xff]   ;;  %113 = vmatprep.subr.bf16.mxu0 %v208_v1  ;;  %v211_v3 = vld [vmem:[#allocation5 + $0x4] ss:$8 sps:$4 sm:$0xff]   ;;  %v213_v4 = vld [vmem:[#allocation5] ss:$8 sps:$4 sm:$0xff]  }
  0x28   :  { %114 = vmatpush1.bf16.msra.mxu0 %v210_v2  ;;  %v60_v5 = vld [vmem:[#allocation2] sm:$0xf]  ;;  %v68_v7 = vshrl.u32 %v67_v6, 7  ;;  %s350_s13 = smov [#allocation9]   ;;  %s351_s15 = smov [#allocation11]  }
  0x29   :  { %115 = vmatprep.subr.bf16.mxu0 %v211_v3  ;;  %v65_v9 = vld [vmem:[%s411_s2] sm:$0x3]  ;;  %s167_s14 = sshll.u32 %s350_s13, 4  ;;  %s177_s16 = sshll.u32 %s351_s15, 4  ;;  %s168_s14 = int_to_ptr.vmem [resolvable:$true] %s167_s14  ;;  %s178_s16 = int_to_ptr.vmem [resolvable:$true] %s177_s16 }
  0x2a   :  { %v69_v8 = vsub.s32 0, %v68_v7  ;;  %v73_v10 = vsub.s32 1, %v68_v7  ;;  %s276_s17 = scalar_lea.vmem %s168_s14, 128  ;;  %p281_p2 = scmp.lt.s32.totalorder %s168_s14, %s168_s14 }
  0x2b   :  { %p277_p1 = scmp.ne.s32.totalorder %s168_s14, %s276_s17  ;;  %p282_p3 = scmp.lt.s32.totalorder %s276_s17, %s276_s17 }
  0x2c   :  { %116 = vmatpush1.bf16.msra.mxu0 %v213_v4  ;;  %v70_v11 = vrot.slane %v65_v9, %v69_v8  ;;  %v74_v12 = vrot.slane %v65_v9, %v73_v10 }
  0x2d   :  { %p283_p4 = por %p282_p3, %p281_p2 }
  0x2f   :  { %198 = vmatmul.mubr.msk.bf16.vlgmr.msra.gmra.mxu0 %vm97_vm0, %v60_v5  ;;  %p284_p5 = pnand %p283_p4, %p277_p1 }
  0xef   :  { %v135_v13 = vpop.f32.mrf.mxu0 }
  0xf0   :  { %v136_v14 = vadd.f32 %v135_v13, %v70_v11 }
  0xf1   :  { %v137_v15 = vpop.f32.mrf.mxu0 }
  0xf2   :  { %142 = vst [vmem:[#allocation9] sm:$0xff] %v136_v14  ;;  %v138_v16 = vadd.f32 %v137_v15, %v74_v12 }
  0xf3   :  { %v139_v17 = vpop.f32.mrf.mxu0 }
  0xf4   :  { %287 = shalt.err (!%p284_p5)
}
  0xf5   :  { %170 = dma.vmem_to_hbm [thread:$0]  %s168_s14, 128, %s414_s5, [#allocation10]   ;;  %143 = vst [vmem:[#allocation11] sm:$0xff] %v138_v16  ;;  %v144_v18 = vmul.f32 0.5, %v138_v16  ;;  %v140_v19 = vpop.f32.mrf.mxu0 }
  0xf6   :  { %s296_s19 = scalar_lea.vmem %s178_s16, 128  ;;  %p301_p7 = scmp.lt.s32.totalorder %s178_s16, %s178_s16 }
  0xf7   :  { %p297_p6 = scmp.ne.s32.totalorder %s178_s16, %s296_s19  ;;  %p302_p8 = scmp.lt.s32.totalorder %s296_s19, %s296_s19 }
  0xf9   :  { %p303_p9 = por %p302_p8, %p301_p7 }
  0xfb   :  { %p304_p10 = pnand %p303_p9, %p297_p6 }
  0xfd   :  { %307 = shalt.err (!%p304_p10)
}
  0xfe   :  { %180 = dma.vmem_to_hbm [thread:$0]  %s178_s16, 128, %s415_s6, [#allocation10]   ;;  %v145_v20 = vmul.f32 1.442695, %v144_v18  ;;  %v147_v21 = vld [vmem:[#allocation7] sm:$0xff] }
  0xff   :  { %s352_s22 = smov [#allocation8]  }
 0x100   :  { %214 = vpow2.f32 %v145_v20  ;;  %s157_s5 = sshll.u32 %s352_s22, 4  ;;  %s158_s5 = int_to_ptr.vmem [resolvable:$true] %s157_s5 }
 0x101   :  { %s316_s23 = scalar_lea.vmem %s158_s5, 128  ;;  %p321_p12 = scmp.lt.s32.totalorder %s158_s5, %s158_s5 }
 0x102   :  { %p317_p11 = scmp.ne.s32.totalorder %s158_s5, %s316_s23  ;;  %p322_p13 = scmp.lt.s32.totalorder %s316_s23, %s316_s23 }
 0x104   :  { %p323_p0 = por %p322_p13, %p321_p12 }
 0x106   :  { %p324_p1 = pnand %p323_p0, %p317_p11 }
 0x10d   :  { %v215_v22 = vpop.eup %214 }
 0x10e   :  { %v148_v23 = vmul.f32 %v215_v22, %v147_v21 }
 0x110   :  { %v149_v24 = vadd.f32 %v148_v23, %v136_v14 }
 0x112   :  { %150 = vst [vmem:[#allocation8] sm:$0xff] %v149_v24 }
 0x113   :  { %327 = shalt.err (!%p324_p1)
}
 0x114   :  { %160 = dma.vmem_to_hbm [thread:$0]  %s158_s5, 128, %s413_s4, [#allocation4]  }
 0x115   :  { %340 = dma.done.wait [#allocation4], 128  }
 0x116   :  { %341 = vsyncadd [#allocation4], 4294967168 }
 0x117   :  { %342 = dma.done.wait [#allocation10], 256  }
 0x118   :  { %343 = vsyncadd [#allocation10], 4294967040 }
 0x119   :  { %190 = vsyncpa [#allocation3], 1 }
 0x11a   :  { %191 = vsyncpa [#allocation6], 1 }
 0x11b   :  { %192 = vsyncpa [#allocation4], 1 }
 0x11c   :  { %193 = vsyncpa [#allocation10], 1 }

</bundles_post_ra>
